<compile_context>
chip_gen: v7x
topology: tpu7x:2x2x1
jax: 0.10.0
libtpu: 0.0.40
codegen_flags: <defaults>
</compile_context>

<pallas_src>
import jax
import jax.numpy as jnp
from jax.experimental import pallas as pl
from jax.experimental.pallas import tpu as pltpu

INPUT_SIZE = 7
HIDDEN1 = 64
HIDDEN2 = 32
OUTPUT_SIZE = 1

IN_PAD = 8      # pad 7 -> 8 feature columns (aligned rows for the streamed operand)
TILE_B = 512    # batch tile: multiple of 8, lane-dense multiple of 128, in 512-2048 range


def _round_up(n, m):
    return ((n + m - 1) // m) * m


def mlp_kernel(xt_ref, w1_ref, b1_ref, w2_ref, b2_ref, w3_ref, b3_ref, o_ref):
    # fc1 + ReLU: (H1, IN_PAD) @ (IN_PAD, TILE) on the MXU, f32 accumulation.
    h1 = jnp.dot(w1_ref[...], xt_ref[...], preferred_element_type=jnp.float32)
    h1 = jnp.maximum(h1 + b1_ref[...], 0.0)
    # fc2 + ReLU: bf16 MXU pass, f32 accumulation.
    h2 = jnp.dot(w2_ref[...], h1.astype(jnp.bfloat16),
                 preferred_element_type=jnp.float32)
    h2 = jnp.maximum(h2 + b2_ref[...], 0.0)
    # fc4 (OUTPUT_SIZE == 1): VPU multiply + cross-sublane reduction instead of an
    # Nx1 MXU matmul; the (1, TILE) result is already lane-dense.
    o = jnp.sum(h2 * w3_ref[...], axis=0, keepdims=True) + b3_ref[...]
    o_ref[...] = o.astype(o_ref.dtype)


@jax.jit
def mlp_forward(x, w1, b1, w2, b2, w3, b3):
    """x: (B, 7) f32. Weights in PyTorch layout: w (out, in), b (out,)."""
    B = x.shape[0]
    tile = TILE_B if B >= TILE_B else _round_up(B, 8)
    bp = _round_up(B, tile)
    num_tiles = bp // tile

    # Pad features 7 -> 8 and batch to a multiple of the tile; stream activations
    # transposed (features on sublanes, batch on lanes), bf16 for the matmuls.
    xp = jnp.zeros((bp, IN_PAD), jnp.float32).at[:B, :INPUT_SIZE].set(x)
    xt = xp.T.astype(jnp.bfloat16)                                   # (IN_PAD, bp)

    w1p = jnp.zeros((HIDDEN1, IN_PAD), jnp.float32).at[:, :INPUT_SIZE].set(w1)
    w1p = w1p.astype(jnp.bfloat16)                                   # (64, 8)
    w2b = w2.astype(jnp.bfloat16)                                    # (32, 64)
    b1c = b1.reshape(HIDDEN1, 1)                                     # f32
    b2c = b2.reshape(HIDDEN2, 1)                                     # f32
    w3c = w3.reshape(HIDDEN2, 1)                                     # f32 (final layer on VPU)
    b3c = b3.reshape(1, 1)                                           # f32

    const = lambda i: (0, 0)  # weights/biases resident in VMEM across all steps
    out = pl.pallas_call(
        mlp_kernel,
        out_shape=jax.ShapeDtypeStruct((1, bp), jnp.float32),
        grid=(num_tiles,),
        in_specs=[
            pl.BlockSpec((IN_PAD, tile), lambda i: (0, i)),          # streamed x tile
            pl.BlockSpec((HIDDEN1, IN_PAD), const),
            pl.BlockSpec((HIDDEN1, 1), const),
            pl.BlockSpec((HIDDEN2, HIDDEN1), const),
            pl.BlockSpec((HIDDEN2, 1), const),
            pl.BlockSpec((HIDDEN2, 1), const),
            pl.BlockSpec((1, 1), const),
        ],
        out_specs=pl.BlockSpec((1, tile), lambda i: (0, i)),         # lane-dense output
        compiler_params=pltpu.CompilerParams(
            dimension_semantics=("parallel",)),                      # 2-TC sharding on v7x
    )(xt, w1p, b1c, w2b, b2c, w3c, b3c)

    return out[0, :B].reshape(B, OUTPUT_SIZE)


def init_params(key):
    # Mimics PyTorch nn.Linear init: uniform(-1/sqrt(fan_in), 1/sqrt(fan_in)),
    # weight shape (out, in), bias shape (out,).
    def linear(key, fan_in, fan_out):
        kw, kb = jax.random.split(key)
        bound = 1.0 / jnp.sqrt(fan_in)
        w = jax.random.uniform(kw, (fan_out, fan_in), jnp.float32, -bound, bound)
        b = jax.random.uniform(kb, (fan_out,), jnp.float32, -bound, bound)
        return w, b

    k1, k2, k3 = jax.random.split(key, 3)
    w1, b1 = linear(k1, INPUT_SIZE, HIDDEN1)
    w2, b2 = linear(k2, HIDDEN1, HIDDEN2)
    w3, b3 = linear(k3, HIDDEN2, OUTPUT_SIZE)
    return w1, b1, w2, b2, w3, b3


def reference(x, w1, b1, w2, b2, w3, b3):
    # Plain-JAX reference with the same bf16-input / f32-accumulation recipe.
    h1 = jnp.dot(x.astype(jnp.bfloat16), w1.T.astype(jnp.bfloat16),
                 preferred_element_type=jnp.float32) + b1
    h1 = jnp.maximum(h1, 0.0)
    h2 = jnp.dot(h1.astype(jnp.bfloat16), w2.T.astype(jnp.bfloat16),
                 preferred_element_type=jnp.float32) + b2
    h2 = jnp.maximum(h2, 0.0)
    return jnp.dot(h2, w3.T) + b3


if __name__ == "__main__":
    key = jax.random.PRNGKey(0)
    kx, kp = jax.random.split(key)

    # batch=2000 pads to 2048 -> 4 pipelined grid steps of TILE_B=512 (and checks
    # the ragged-batch padding/slicing path).  Total data is still tiny.
    batch = 2000
    x = jax.random.normal(kx, (batch, INPUT_SIZE), jnp.float32)
    params = init_params(kp)

    out = mlp_forward(x, *params)
    out = jax.block_until_ready(out)
    assert out.shape == (batch, OUTPUT_SIZE)

    ref = reference(x, *params)
    max_err = float(jnp.max(jnp.abs(out - ref)))
    assert jnp.allclose(out, ref, atol=1e-2, rtol=1e-2), f"max abs err = {max_err}"

    print("KERNEL_OK")
</pallas_src>

<mosaic_0001>
module attributes {stable_mosaic.version = 11 : i64} {
  func.func @mlp_kernel(%arg0: i32, %arg1: memref<8x512xbf16, #tpu.memory_space<vmem>>, %arg2: memref<64x8xbf16, #tpu.memory_space<vmem>>, %arg3: memref<64x1xf32, #tpu.memory_space<vmem>>, %arg4: memref<32x64xbf16, #tpu.memory_space<vmem>>, %arg5: memref<32x1xf32, #tpu.memory_space<vmem>>, %arg6: memref<32x1xf32, #tpu.memory_space<vmem>>, %arg7: memref<1x1xf32, #tpu.memory_space<vmem>>, %arg8: memref<1x512xf32, #tpu.memory_space<vmem>>) attributes {dimension_semantics = [#tpu.dimension_semantics<parallel>], iteration_bounds = array<i64: 4>, scalar_prefetch = 0 : i64, scratch_operands = 0 : i64, tpu.core_type = #tpu.core_type<tc>, window_params = [{transform_indices = @transform_0, window_bounds = array<i64: 8, 512>}, {pipeline_mode = #tpu.pipeline_mode<synchronous>, transform_indices = @transform_1, window_bounds = array<i64: 64, 8>}, {pipeline_mode = #tpu.pipeline_mode<synchronous>, transform_indices = @transform_2, window_bounds = array<i64: 64, 1>}, {pipeline_mode = #tpu.pipeline_mode<synchronous>, transform_indices = @transform_3, window_bounds = array<i64: 32, 64>}, {pipeline_mode = #tpu.pipeline_mode<synchronous>, transform_indices = @transform_4, window_bounds = array<i64: 32, 1>}, {pipeline_mode = #tpu.pipeline_mode<synchronous>, transform_indices = @transform_5, window_bounds = array<i64: 32, 1>}, {pipeline_mode = #tpu.pipeline_mode<synchronous>, transform_indices = @transform_6, window_bounds = array<i64: 1, 1>}, {transform_indices = @transform_7, window_bounds = array<i64: 1, 512>}]} {
    %c0 = arith.constant 0 : index
    %c0_0 = arith.constant 0 : index
    %0 = vector.load %arg2[%c0, %c0_0] : memref<64x8xbf16, #tpu.memory_space<vmem>>, vector<64x8xbf16>
    %c0_1 = arith.constant 0 : index
    %c0_2 = arith.constant 0 : index
    %1 = vector.load %arg1[%c0_1, %c0_2] : memref<8x512xbf16, #tpu.memory_space<vmem>>, vector<8x512xbf16>
    %cst = arith.constant dense<0.000000e+00> : vector<64x512xf32>
    %2 = tpu.matmul %0, %1, %cst {dimension_numbers = #tpu.dot_dimension_numbers<[1], [0], [0], [1], [0, 0, 1, 1], [], []>} : vector<64x8xbf16>, vector<8x512xbf16>, vector<64x512xf32> -> vector<64x512xf32>
    %c0_3 = arith.constant 0 : index
    %c0_4 = arith.constant 0 : index
    %3 = vector.load %arg3[%c0_3, %c0_4] : memref<64x1xf32, #tpu.memory_space<vmem>>, vector<64x1xf32>
    %4 = vector.broadcast %3 : vector<64x1xf32> to vector<64x512xf32>
    %5 = arith.addf %2, %4 : vector<64x512xf32>
    %cst_5 = arith.constant 0.000000e+00 : f32
    %6 = vector.broadcast %cst_5 : f32 to vector<64x512xf32>
    %7 = arith.maximumf %5, %6 : vector<64x512xf32>
    %c0_6 = arith.constant 0 : index
    %c0_7 = arith.constant 0 : index
    %8 = vector.load %arg4[%c0_6, %c0_7] : memref<32x64xbf16, #tpu.memory_space<vmem>>, vector<32x64xbf16>
    %9 = arith.truncf %7 : vector<64x512xf32> to vector<64x512xbf16>
    %cst_8 = arith.constant dense<0.000000e+00> : vector<32x512xf32>
    %10 = tpu.matmul %8, %9, %cst_8 {dimension_numbers = #tpu.dot_dimension_numbers<[1], [0], [0], [1], [0, 0, 1, 1], [], []>} : vector<32x64xbf16>, vector<64x512xbf16>, vector<32x512xf32> -> vector<32x512xf32>
    %c0_9 = arith.constant 0 : index
    %c0_10 = arith.constant 0 : index
    %11 = vector.load %arg5[%c0_9, %c0_10] : memref<32x1xf32, #tpu.memory_space<vmem>>, vector<32x1xf32>
    %12 = vector.broadcast %11 : vector<32x1xf32> to vector<32x512xf32>
    %13 = arith.addf %10, %12 : vector<32x512xf32>
    %cst_11 = arith.constant 0.000000e+00 : f32
    %14 = vector.broadcast %cst_11 : f32 to vector<32x512xf32>
    %15 = arith.maximumf %13, %14 : vector<32x512xf32>
    %c0_12 = arith.constant 0 : index
    %c0_13 = arith.constant 0 : index
    %16 = vector.load %arg6[%c0_12, %c0_13] : memref<32x1xf32, #tpu.memory_space<vmem>>, vector<32x1xf32>
    %17 = vector.broadcast %16 : vector<32x1xf32> to vector<32x512xf32>
    %18 = arith.mulf %15, %17 : vector<32x512xf32>
    %cst_14 = arith.constant dense<0.000000e+00> : vector<512xf32>
    %19 = vector.multi_reduction <add>, %18, %cst_14 [0] : vector<32x512xf32> to vector<512xf32>
    %20 = vector.shape_cast %19 : vector<512xf32> to vector<1x512xf32>
    %c0_15 = arith.constant 0 : index
    %c0_16 = arith.constant 0 : index
    %21 = vector.load %arg7[%c0_15, %c0_16] : memref<1x1xf32, #tpu.memory_space<vmem>>, vector<1x1xf32>
    %22 = vector.broadcast %21 : vector<1x1xf32> to vector<1x512xf32>
    %23 = arith.addf %20, %22 : vector<1x512xf32>
    %c0_17 = arith.constant 0 : index
    %c0_18 = arith.constant 0 : index
    %24 = vector.load %arg8[%c0_17, %c0_18] : memref<1x512xf32, #tpu.memory_space<vmem>>, vector<1x512xf32>
    tpu.vector_store %arg8[%c0_17, %c0_18], %23 {strides = array<i32>} : memref<1x512xf32, #tpu.memory_space<vmem>>, vector<1x512xf32>,
    return
  }
  func.func @transform_0(%arg0: i32) -> (i32, i32) {
    %c0_i32 = arith.constant 0 : i32
    %c0_i32_0 = arith.constant 0 : i32
    return %c0_i32, %arg0 : i32, i32
  }
  func.func @transform_1(%arg0: i32) -> (i32, i32) {
    %c0_i32 = arith.constant 0 : i32
    %c0_i32_0 = arith.constant 0 : i32
    %c0_i32_1 = arith.constant 0 : i32
    return %c0_i32, %c0_i32_0 : i32, i32
  }
  func.func @transform_2(%arg0: i32) -> (i32, i32) {
    %c0_i32 = arith.constant 0 : i32
    %c0_i32_0 = arith.constant 0 : i32
    %c0_i32_1 = arith.constant 0 : i32
    return %c0_i32, %c0_i32_0 : i32, i32
  }
  func.func @transform_3(%arg0: i32) -> (i32, i32) {
    %c0_i32 = arith.constant 0 : i32
    %c0_i32_0 = arith.constant 0 : i32
    %c0_i32_1 = arith.constant 0 : i32
    return %c0_i32, %c0_i32_0 : i32, i32
  }
  func.func @transform_4(%arg0: i32) -> (i32, i32) {
    %c0_i32 = arith.constant 0 : i32
    %c0_i32_0 = arith.constant 0 : i32
    %c0_i32_1 = arith.constant 0 : i32
    return %c0_i32, %c0_i32_0 : i32, i32
  }
  func.func @transform_5(%arg0: i32) -> (i32, i32) {
    %c0_i32 = arith.constant 0 : i32
    %c0_i32_0 = arith.constant 0 : i32
    %c0_i32_1 = arith.constant 0 : i32
    return %c0_i32, %c0_i32_0 : i32, i32
  }
  func.func @transform_6(%arg0: i32) -> (i32, i32) {
    %c0_i32 = arith.constant 0 : i32
    %c0_i32_0 = arith.constant 0 : i32
    %c0_i32_1 = arith.constant 0 : i32
    return %c0_i32, %c0_i32_0 : i32, i32
  }
  func.func @transform_7(%arg0: i32) -> (i32, i32) {
    %c0_i32 = arith.constant 0 : i32
    %c0_i32_0 = arith.constant 0 : i32
    return %c0_i32, %arg0 : i32, i32
  }
}

</mosaic_0001>

<bundles_post_ra>
// kernel: mlp_forward.1
= control target key start
LH: loop header
LB: loop body
LE: loop exit
PB: predicated region body
PF: predicated region fallthrough
CT: control target
= control target key end

     0   :  { %s1041_s26 = smov 0   ;;  %s1150_s0 = inlined_call_operand.vmem [shape: bf16[8,2048], index: 0, kind: input, shape index: {}]   ;;  %s1151_s1 = inlined_call_operand.vmem [shape: bf16[64,8], index: 1, kind: input, shape index: {}]   ;;  %s1152_s2 = inlined_call_operand.vmem [shape: f32[64,1], index: 2, kind: input, shape index: {}]   ;;  %s1153_s3 = inlined_call_operand.vmem [shape: bf16[32,64], index: 3, kind: input, shape index: {}]   ;;  %s1154_s4 = inlined_call_operand.vmem [shape: f32[32,1], index: 4, kind: input, shape index: {}]   ;;  %s1155_s5 = inlined_call_operand.vmem [shape: f32[32,1], index: 5, kind: input, shape index: {}]   ;;  %s1156_s6 = inlined_call_operand.<no memory space> [shape: f32[1,1], index: 6, kind: input, shape index: {}]   ;;  %s1157_s7 = inlined_call_operand.vmem [shape: f32[1,2048], index: 7, kind: output, shape index: {}]  }
   0x1   :  { %v12_v0 = vstv %s1156_s6 }
   0x2   :  { %13 = vst [vmem:[#allocation2] sm:$0x1] %v12_v0 }
   0x3 LB: > { %s932_s27 = sadd.s32 4294967295, %s994_s26   ;;  %p936_p0 = scmp.ge.s32.totalorder %s994_s26, 1  ;;  %s994_s26 = sphi %s1041_s26, %s19_s26  }
   0x4   : > { %p240_p1 = scmp.lt.s32.totalorder %s994_s26, 5 }
   0x6   : > { %p241_p2 = pnand %p936_p0, %p240_p1 }
   0x7   : > { %s937_s28 = sshll.u32 (!%p241_p2), %s932_s27, 2  ;;  %v996_v1 = vmov (!%p241_p2), 0   ;;  %v293_v2 = vld [vmem:[%s1152_s2] sm:$0xff] (!%p241_p2)  ;;  %v295_v3 = vld [vmem:[%s1152_s2 + $0x10] sm:$0xff] (!%p241_p2)  ;;  %v294_v4 = vld [vmem:[%s1152_s2 + $0x8] sm:$0xff] (!%p241_p2)  ;;  %vm384_vm0 = vcmask (!%p241_p2), 1043456  }
   0x8   : > { %244 = sbr.rel (%p241_p2) target bundleno = 528 (0x210), region = 48  ;;  %p272_p3 = scmp.lt.s32.totalorder (!%p241_p2), %s937_s28, 15  ;;  %429 = vmatprep.mubr.bf16.mxu0 (!%p241_p2), %v996_v1  ;;  %502 = vmatprep.mubr.bf16.mxu1 (!%p241_p2), %v996_v1  ;;  %v296_v11 = vld [vmem:[%s1152_s2 + $0x18] sm:$0xff] (!%p241_p2)  ;;  %v982_v14 = vld [vmem:[%s1151_s1] sm:$0xff] (!%p241_p2)   ;;  %vm371_vm1 = vcmask (!%p241_p2), 64512   ;;  %v298_v16 = vld [vmem:[%s1152_s2 + $0x28] sm:$0xff] (!%p241_p2) }
   0x9   : > { %976 = vset.pattern.permute.xlu0 (!%p241_p2), %v996_v1  ;;  %977 = vset.pattern.permute.xlu1 (!%p241_p2), %v996_v1  ;;  %v297_v15 = vld [vmem:[%s1152_s2 + $0x20] sm:$0xff] (!%p241_p2)  ;;  %v299_v17 = vld [vmem:[%s1152_s2 + $0x30] sm:$0xff] (!%p241_p2)  ;;  %v300_v18 = vld [vmem:[%s1152_s2 + $0x38] sm:$0xff] (!%p241_p2)  ;;  %vm629_vm2 = vcmask (!%p241_p2), 523264  }
   0xa   : > { %303 = vperm.xlu0 (!%p241_p2), %976, %v293_v2   ;;  %313 = vperm.xlu1 (!%p241_p2), %977, %v295_v3   ;;  %v983_v19 = vld [vmem:[%s1151_s1 + $0x8] sm:$0xff] (!%p241_p2)   ;;  %v595_v20 = vld [vmem:[%s1154_s4] sm:$0xff] (!%p241_p2)  ;;  %v597_v22 = vld [vmem:[%s1154_s4 + $0x10] sm:$0xff] (!%p241_p2) }
   0xb   : > { %v596_v21 = vld [vmem:[%s1154_s4 + $0x8] sm:$0xff] (!%p241_p2)  ;;  %v598_v23 = vld [vmem:[%s1154_s4 + $0x18] sm:$0xff] (!%p241_p2)  ;;  %v984_v24 = vld [vmem:[%s1151_s1 + $0x10] sm:$0xff] (!%p241_p2)  }
   0xc   : > { %v758_v25 = vld [vmem:[%s1155_s5] sm:$0xff] (!%p241_p2)  ;;  %v759_v26 = vld [vmem:[%s1155_s5 + $0x8] sm:$0xff] (!%p241_p2)  ;;  %v760_v27 = vld [vmem:[%s1155_s5 + $0x10] sm:$0xff] (!%p241_p2) }
   0xd   : > { %v761_v28 = vld [vmem:[%s1155_s5 + $0x18] sm:$0xff] (!%p241_p2)  ;;  %v834_v30 = vld [vmem:[#allocation2] sm:$0x1] (!%p241_p2) }
   0xe   : > { %308 = vperm.xlu0 (!%p241_p2), %976, %v294_v4   ;;  %318 = vperm.xlu1 (!%p241_p2), %977, %v296_v11   ;;  %v985_v29 = vld [vmem:[%s1151_s1 + $0x18] sm:$0xff] (!%p241_p2)  }
   0xf   : > { %s1159_s28 = smov (!%p272_p3, %s937_s28), 15 }
  0x10   : > { %s938_s30 = sshll.u32 %s1159_s28, 2  ;;  %s280_s11 = scalar_lea.vmem %s1157_s7, %s1159_s28 }
  0x11   : > { %s275_s12 = scalar_lea.vmem %s1150_s0, %s938_s30 }
  0x12   : > { %v291_v5 = vld [vmem:[%s275_s12] sm:$0xff]  ;;  %v292_v6 = vld [vmem:[%s275_s12 + $0x8] sm:$0xff]  ;;  %323 = vperm.xlu0 %976, %v297_v15   ;;  %328 = vperm.xlu1 %977, %v298_v16  }
  0x13   : > { %v945_v7 = vcombine.high %v291_v5, %v291_v5  ;;  %v947_v8 = vcombine.high %v292_v6, %v292_v6  ;;  %v944_v9 = vcombine.low %v291_v5, %v291_v5  ;;  %v946_v10 = vcombine.low %v292_v6, %v292_v6 }
  0x15   : > { %948 = vmatprep.subr.msk.bf16.mxu0 %vm384_vm0, %v945_v7  ;;  %953 = vmatprep.subr.msk.bf16.mxu1 %vm384_vm0, %v947_v8  ;;  %v386_v12 = vsel %vm384_vm0, %v944_v9, 0  ;;  %v392_v13 = vsel %vm384_vm0, %v946_v10, 0 }
  0x16   : > { %398 = vmatpush1.bf16.msra.mxu0 %v386_v12  ;;  %471 = vmatpush1.bf16.msra.mxu1 %v392_v13 }
  0x17   : > { %333 = vperm.xlu0 %976, %v299_v17   ;;  %338 = vperm.xlu1 %977, %v300_v18  }
  0x19   : > { %949 = vmatmul.mubr.msk.bf16.vlgmr.msra.gmra.mrb[0].mxu0 %vm371_vm1, %v982_v14  ;;  %954 = vmatmul.mubr.msk.bf16.vlgmr.msra.gmra.mrb[0].mxu1 %vm371_vm1, %v982_v14 }
  0x1a   : > { %439 = vmatprep.mubr.bf16.mxu0 %v996_v1  ;;  %512 = vmatprep.mubr.bf16.mxu1 %v996_v1 }
  0x1b   : > { %601 = vperm.xlu0 %976, %v595_v20   ;;  %606 = vperm.xlu1 %977, %v596_v21  }
  0x1f   : > { %611 = vperm.xlu0 %976, %v597_v22   ;;  %616 = vperm.xlu1 %977, %v598_v23  }
  0x21   : > { %950 = vmatmul.mubr.msk.bf16.gmra.mrb[4].mxu0 %vm371_vm1, %v983_v19  ;;  %955 = vmatmul.mubr.msk.bf16.gmra.mrb[4].mxu1 %vm371_vm1, %v983_v19 }
  0x22   : > { %449 = vmatprep.mubr.bf16.mxu0 %v996_v1  ;;  %522 = vmatprep.mubr.bf16.mxu1 %v996_v1 }
  0x23   : > { %764 = vperm.xlu0 %976, %v758_v25   ;;  %769 = vperm.xlu1 %977, %v759_v26  }
  0x27   : > { %774 = vperm.xlu0 %976, %v760_v27   ;;  %779 = vperm.xlu1 %977, %v761_v28  }
  0x29   : > { %951 = vmatmul.mubr.msk.bf16.gmra.mrb[8].mxu0 %vm371_vm1, %v984_v24  ;;  %956 = vmatmul.mubr.msk.bf16.gmra.mrb[8].mxu1 %vm371_vm1, %v984_v24 }
  0x2a   : > { %459 = vmatprep.mubr.bf16.mxu0 %v996_v1  ;;  %532 = vmatprep.mubr.bf16.mxu1 %v996_v1 }
  0x2b   : > { %837 = vperm.xlu0 %976, %v834_v30  }
  0x31   : > { %952 = vmatmul.mubr.msk.bf16.gmra.mrb[12].mxu0 %vm371_vm1, %v985_v29  ;;  %957 = vmatmul.mubr.msk.bf16.gmra.mrb[12].mxu1 %vm371_vm1, %v985_v29 }
  0x32   : > { %668 = vmatprep.mubr.bf16.mxu0 %v996_v1  ;;  %721 = vmatprep.mubr.bf16.mxu1 %v996_v1 }
  0x89   : > { %v304_v31 = vpop.permute.xlu0 %303  ;;  %v314_v33 = vpop.permute.xlu1 %313 }
  0x8d   : > { %v309_v32 = vpop.permute.xlu0 %308  ;;  %v319_v58 = vpop.permute.xlu1 %318 }
  0x91   : > { %v324_v24 = vpop.permute.xlu0 %323  ;;  %v329_v25 = vpop.permute.xlu1 %328 }
  0xec   : > { %v431_v34 = vpop.f32.mrb[0].mxu0  ;;  %v504_v35 = vpop.f32.mrb[0].mxu1 }
  0xed   : > { %v432_v36 = vadd.f32 %v431_v34, %v304_v31  ;;  %v505_v37 = vadd.f32 %v504_v35, %v304_v31  ;;  %v433_v38 = vpop.f32.mrb[1].mxu0  ;;  %v506_v39 = vpop.f32.mrb[1].mxu1 }
  0xee   : > { %v434_v40 = vadd.f32 %v433_v38, %v304_v31  ;;  %v507_v41 = vadd.f32 %v506_v39, %v304_v31  ;;  %v435_v42 = vpop.f32.mrb[2].mxu0  ;;  %v508_v43 = vpop.f32.mrb[2].mxu1 }
  0xef   : > { %v436_v44 = vadd.f32 %v435_v42, %v309_v32  ;;  %v509_v45 = vadd.f32 %v508_v43, %v309_v32  ;;  %v437_v46 = vpop.f32.mrb[3].mxu0  ;;  %v510_v47 = vpop.f32.mrb[3].mxu1  ;;  %v543_v50 = vmax.f32 %v432_v36, 0.0  ;;  %v545_v51 = vmax.f32 %v505_v37, 0.0 }
  0xf0   : > { %v438_v48 = vadd.f32 %v437_v46, %v309_v32  ;;  %v511_v49 = vadd.f32 %v510_v47, %v309_v32  ;;  %v544_v54 = vmax.f32 %v434_v40, 0.0  ;;  %v546_v55 = vmax.f32 %v507_v41, 0.0 }
  0xf1   : > { %v547_v52 = vmax.f32 %v436_v44, 0.0  ;;  %v549_v53 = vmax.f32 %v509_v45, 0.0 }
  0xf2   : > { %v548_v56 = vmax.f32 %v438_v48, 0.0  ;;  %v550_v57 = vmax.f32 %v511_v49, 0.0 }
  0xf3   : > { %v579_v59 = vpack.c.bf16 %v547_v52, %v543_v50  ;;  %v581_v60 = vpack.c.bf16 %v549_v53, %v545_v51 }
  0xf4   : > { %v580_v61 = vpack.c.bf16 %v548_v56, %v544_v54  ;;  %v582_v62 = vpack.c.bf16 %v550_v57, %v546_v55  ;;  %v441_v63 = vpop.f32.mrb[4].mxu0  ;;  %v514_v0 = vpop.f32.mrb[4].mxu1 }
  0xf5   : > { %v442_v2 = vadd.f32 %v441_v63, %v314_v33  ;;  %v515_v3 = vadd.f32 %v514_v0, %v314_v33  ;;  %v443_v4 = vpop.f32.mrb[5].mxu0  ;;  %v516_v5 = vpop.f32.mrb[5].mxu1 }
  0xf6   : > { %v444_v6 = vadd.f32 %v443_v4, %v314_v33  ;;  %v517_v7 = vadd.f32 %v516_v5, %v314_v33  ;;  %v445_v8 = vpop.f32.mrb[6].mxu0  ;;  %v518_v9 = vpop.f32.mrb[6].mxu1  ;;  %636 = vmatprep.subr.bf16.mxu0 %v580_v61  ;;  %689 = vmatprep.subr.bf16.mxu1 %v582_v62 }
  0xf7   : > { %v446_v10 = vadd.f32 %v445_v8, %v319_v58  ;;  %v519_v11 = vadd.f32 %v518_v9, %v319_v58  ;;  %v447_v12 = vpop.f32.mrb[7].mxu0  ;;  %v520_v13 = vpop.f32.mrb[7].mxu1  ;;  %637 = vmatpush1.bf16.msra.mxu0 %v579_v59  ;;  %690 = vmatpush1.bf16.msra.mxu1 %v581_v60  ;;  %v551_v16 = vmax.f32 %v442_v2, 0.0  ;;  %v553_v17 = vmax.f32 %v515_v3, 0.0 }
  0xf8   : > { %v448_v14 = vadd.f32 %v447_v12, %v319_v58  ;;  %v521_v15 = vadd.f32 %v520_v13, %v319_v58  ;;  %v552_v20 = vmax.f32 %v444_v6, 0.0  ;;  %v554_v21 = vmax.f32 %v517_v7, 0.0  ;;  %v334_v54 = vpop.permute.xlu0 %333  ;;  %v339_v55 = vpop.permute.xlu1 %338 }
  0xf9   : > { %v555_v18 = vmax.f32 %v446_v10, 0.0  ;;  %v557_v19 = vmax.f32 %v519_v11, 0.0 }
  0xfa   : > { %v556_v22 = vmax.f32 %v448_v14, 0.0  ;;  %v558_v23 = vmax.f32 %v521_v15, 0.0 }
  0xfb   : > { %v583_v26 = vpack.c.bf16 %v555_v18, %v551_v16  ;;  %v585_v27 = vpack.c.bf16 %v557_v19, %v553_v17 }
  0xfc   : > { %v584_v28 = vpack.c.bf16 %v556_v22, %v552_v20  ;;  %v586_v29 = vpack.c.bf16 %v558_v23, %v554_v21  ;;  %v451_v30 = vpop.f32.mrb[8].mxu0  ;;  %v524_v31 = vpop.f32.mrb[8].mxu1 }
  0xfd   : > { %v452_v32 = vadd.f32 %v451_v30, %v324_v24  ;;  %v525_v33 = vadd.f32 %v524_v31, %v324_v24  ;;  %v453_v34 = vpop.f32.mrb[9].mxu0  ;;  %v526_v35 = vpop.f32.mrb[9].mxu1 }
  0xfe   : > { %v454_v36 = vadd.f32 %v453_v34, %v324_v24  ;;  %v527_v37 = vadd.f32 %v526_v35, %v324_v24  ;;  %v455_v38 = vpop.f32.mrb[10].mxu0  ;;  %v528_v39 = vpop.f32.mrb[10].mxu1  ;;  %638 = vmatprep.subr.bf16.mxu0 %v584_v28  ;;  %691 = vmatprep.subr.bf16.mxu1 %v586_v29 }
  0xff   : > { %v456_v40 = vadd.f32 %v455_v38, %v329_v25  ;;  %v529_v41 = vadd.f32 %v528_v39, %v329_v25  ;;  %v457_v42 = vpop.f32.mrb[11].mxu0  ;;  %v530_v43 = vpop.f32.mrb[11].mxu1  ;;  %639 = vmatpush1.bf16.msra.mxu0 %v583_v26  ;;  %692 = vmatpush1.bf16.msra.mxu1 %v585_v27  ;;  %v559_v46 = vmax.f32 %v452_v32, 0.0  ;;  %v561_v47 = vmax.f32 %v525_v33, 0.0  ;;  %v987_v26 = vld [vmem:[%s1153_s3 + $0x8] sm:$0xff]  }
 0x100   : > { %v458_v44 = vadd.f32 %v457_v42, %v329_v25  ;;  %v531_v45 = vadd.f32 %v530_v43, %v329_v25  ;;  %v560_v50 = vmax.f32 %v454_v36, 0.0  ;;  %v562_v51 = vmax.f32 %v527_v37, 0.0  ;;  %v986_v25 = vld [vmem:[%s1153_s3] sm:$0xff]   ;;  %v602_v27 = vpop.permute.xlu0 %601  ;;  %v607_v28 = vpop.permute.xlu1 %606 }
 0x101   : > { %v563_v48 = vmax.f32 %v456_v40, 0.0  ;;  %v565_v49 = vmax.f32 %v529_v41, 0.0 }
 0x102   : > { %v564_v52 = vmax.f32 %v458_v44, 0.0  ;;  %v566_v53 = vmax.f32 %v531_v45, 0.0 }
 0x103   : > { %v587_v56 = vpack.c.bf16 %v563_v48, %v559_v46  ;;  %v589_v57 = vpack.c.bf16 %v565_v49, %v561_v47 }
 0x104   : > { %v588_v58 = vpack.c.bf16 %v564_v52, %v560_v50  ;;  %v590_v59 = vpack.c.bf16 %v566_v53, %v562_v51  ;;  %v461_v60 = vpop.f32.mrb[12].mxu0  ;;  %v534_v61 = vpop.f32.mrb[12].mxu1 }
 0x105   : > { %v462_v62 = vadd.f32 %v461_v60, %v334_v54  ;;  %v535_v63 = vadd.f32 %v534_v61, %v334_v54  ;;  %v463_v0 = vpop.f32.mrb[13].mxu0  ;;  %v536_v2 = vpop.f32.mrb[13].mxu1 }
 0x106   : > { %v464_v3 = vadd.f32 %v463_v0, %v334_v54  ;;  %v537_v4 = vadd.f32 %v536_v2, %v334_v54  ;;  %v465_v5 = vpop.f32.mrb[14].mxu0  ;;  %v538_v6 = vpop.f32.mrb[14].mxu1  ;;  %640 = vmatprep.subr.bf16.mxu0 %v588_v58  ;;  %693 = vmatprep.subr.bf16.mxu1 %v590_v59 }
 0x107   : > { %v466_v7 = vadd.f32 %v465_v5, %v339_v55  ;;  %v539_v8 = vadd.f32 %v538_v6, %v339_v55  ;;  %v467_v9 = vpop.f32.mrb[15].mxu0  ;;  %v540_v10 = vpop.f32.mrb[15].mxu1  ;;  %641 = vmatpush1.bf16.msra.mxu0 %v587_v56  ;;  %694 = vmatpush1.bf16.msra.mxu1 %v589_v57  ;;  %v567_v13 = vmax.f32 %v462_v62, 0.0  ;;  %v569_v14 = vmax.f32 %v535_v63, 0.0 }
 0x108   : > { %v468_v11 = vadd.f32 %v467_v9, %v339_v55  ;;  %v541_v12 = vadd.f32 %v540_v10, %v339_v55  ;;  %v568_v17 = vmax.f32 %v464_v3, 0.0  ;;  %v570_v18 = vmax.f32 %v537_v4, 0.0  ;;  %v612_v29 = vpop.permute.xlu0 %611  ;;  %v617_v30 = vpop.permute.xlu1 %616 }
 0x109   : > { %v571_v15 = vmax.f32 %v466_v7, 0.0  ;;  %v573_v16 = vmax.f32 %v539_v8, 0.0 }
 0x10a   : > { %v572_v19 = vmax.f32 %v468_v11, 0.0  ;;  %v574_v20 = vmax.f32 %v541_v12, 0.0 }
 0x10b   : > { %v591_v21 = vpack.c.bf16 %v571_v15, %v567_v13  ;;  %v593_v22 = vpack.c.bf16 %v573_v16, %v569_v14 }
 0x10c   : > { %v592_v23 = vpack.c.bf16 %v572_v19, %v568_v17  ;;  %v594_v24 = vpack.c.bf16 %v574_v20, %v570_v18  ;;  %v765_v52 = vpop.permute.xlu0 %764  ;;  %v770_v53 = vpop.permute.xlu1 %769 }
 0x10e   : > { %642 = vmatprep.subr.bf16.mxu0 %v592_v23  ;;  %695 = vmatprep.subr.bf16.mxu1 %v594_v24 }
 0x10f   : > { %643 = vmatpush1.bf16.msra.mxu0 %v591_v21  ;;  %696 = vmatpush1.bf16.msra.mxu1 %v593_v22 }
 0x110   : > { %v775_v21 = vpop.permute.xlu0 %774 }
 0x112   : > { %960 = vmatmul.mubr.msk.bf16.vlgmr.msra.gmra.mrb[16].mxu0 %vm629_vm2, %v986_v25  ;;  %962 = vmatmul.mubr.msk.bf16.vlgmr.msra.gmra.mrb[16].mxu1 %vm629_vm2, %v986_v25 }
 0x113   : > { %678 = vmatprep.mubr.bf16.mxu0 %v996_v1  ;;  %731 = vmatprep.mubr.bf16.mxu1 %v996_v1 }
 0x11a   : > { %961 = vmatmul.mubr.msk.bf16.gmra.mrb[20].mxu0 %vm629_vm2, %v987_v26  ;;  %963 = vmatmul.mubr.msk.bf16.gmra.mrb[20].mxu1 %vm629_vm2, %v987_v26 }
 0x1e5   : > { %v670_v31 = vpop.f32.mrb[16].mxu0  ;;  %v723_v32 = vpop.f32.mrb[16].mxu1 }
 0x1e6   : > { %v671_v33 = vadd.f32 %v670_v31, %v602_v27  ;;  %v724_v34 = vadd.f32 %v723_v32, %v602_v27  ;;  %v672_v35 = vpop.f32.mrb[17].mxu0  ;;  %v725_v36 = vpop.f32.mrb[17].mxu1 }
 0x1e7   : > { %v673_v37 = vadd.f32 %v672_v35, %v602_v27  ;;  %v726_v38 = vadd.f32 %v725_v36, %v602_v27  ;;  %v674_v39 = vpop.f32.mrb[18].mxu0  ;;  %v727_v1 = vpop.f32.mrb[18].mxu1 }
 0x1e8   : > { %v742_v40 = vmax.f32 %v671_v33, 0.0  ;;  %v744_v41 = vmax.f32 %v724_v34, 0.0  ;;  %v675_v42 = vadd.f32 %v674_v39, %v607_v28  ;;  %v728_v43 = vadd.f32 %v727_v1, %v607_v28  ;;  %v676_v44 = vpop.f32.mrb[19].mxu0  ;;  %v729_v45 = vpop.f32.mrb[19].mxu1 }
 0x1e9   : > { %v743_v46 = vmax.f32 %v673_v37, 0.0  ;;  %v745_v47 = vmax.f32 %v726_v38, 0.0  ;;  %v677_v48 = vadd.f32 %v676_v44, %v607_v28  ;;  %v730_v49 = vadd.f32 %v729_v45, %v607_v28  ;;  %v780_v32 = vpop.permute.xlu1 %779 }
 0x1ea   : > { %v746_v50 = vmax.f32 %v675_v42, 0.0  ;;  %v748_v51 = vmax.f32 %v728_v43, 0.0  ;;  %v782_v56 = vmul.f32 %v765_v52, %v742_v40  ;;  %v784_v57 = vmul.f32 %v765_v52, %v744_v41 }
 0x1eb   : > { %v747_v54 = vmax.f32 %v677_v48, 0.0  ;;  %v749_v55 = vmax.f32 %v730_v49, 0.0  ;;  %v783_v60 = vmul.f32 %v765_v52, %v743_v46  ;;  %v785_v61 = vmul.f32 %v765_v52, %v745_v47 }
 0x1ec   : > { %v786_v58 = vmul.f32 %v770_v53, %v746_v50  ;;  %v788_v59 = vmul.f32 %v770_v53, %v748_v51  ;;  %v840_v43 = vlaneseq }
 0x1ed   : > { %v787_v62 = vmul.f32 %v770_v53, %v747_v54  ;;  %v789_v63 = vmul.f32 %v770_v53, %v749_v55  ;;  %v680_v0 = vpop.f32.mrb[20].mxu0  ;;  %v733_v2 = vpop.f32.mrb[20].mxu1 }
 0x1ee   : > { %v798_v3 = vadd.f32 %v786_v58, %v782_v56  ;;  %v816_v4 = vadd.f32 %v788_v59, %v784_v57  ;;  %v681_v5 = vadd.f32 %v680_v0, %v612_v29  ;;  %v734_v6 = vadd.f32 %v733_v2, %v612_v29  ;;  %v682_v7 = vpop.f32.mrb[21].mxu0  ;;  %v735_v8 = vpop.f32.mrb[21].mxu1 }
 0x1ef   : > { %v807_v9 = vadd.f32 %v787_v62, %v783_v60  ;;  %v825_v10 = vadd.f32 %v789_v63, %v785_v61  ;;  %v683_v11 = vadd.f32 %v682_v7, %v612_v29  ;;  %v736_v12 = vadd.f32 %v735_v8, %v612_v29  ;;  %v684_v13 = vpop.f32.mrb[22].mxu0  ;;  %v737_v14 = vpop.f32.mrb[22].mxu1 }
 0x1f0   : > { %v750_v15 = vmax.f32 %v681_v5, 0.0  ;;  %v752_v16 = vmax.f32 %v734_v6, 0.0  ;;  %v685_v17 = vadd.f32 %v684_v13, %v617_v30  ;;  %v738_v18 = vadd.f32 %v737_v14, %v617_v30  ;;  %v686_v19 = vpop.f32.mrb[23].mxu0  ;;  %v739_v20 = vpop.f32.mrb[23].mxu1 }
 0x1f1   : > { %v751_v22 = vmax.f32 %v683_v11, 0.0  ;;  %v753_v23 = vmax.f32 %v736_v12, 0.0  ;;  %v687_v24 = vadd.f32 %v686_v19, %v617_v30  ;;  %v740_v25 = vadd.f32 %v739_v20, %v617_v30  ;;  %v838_v2 = vpop.permute.xlu0 %837 }
 0x1f2   : > { %v790_v26 = vmul.f32 %v775_v21, %v750_v15  ;;  %v792_v27 = vmul.f32 %v775_v21, %v752_v16  ;;  %v754_v28 = vmax.f32 %v685_v17, 0.0  ;;  %v756_v31 = vmax.f32 %v738_v18, 0.0 }
 0x1f3   : > { %v791_v33 = vmul.f32 %v775_v21, %v751_v22  ;;  %v793_v29 = vmul.f32 %v775_v21, %v753_v23  ;;  %v755_v34 = vmax.f32 %v687_v24, 0.0  ;;  %v757_v35 = vmax.f32 %v740_v25, 0.0 }
 0x1f4   : > { %v799_v36 = vadd.f32 %v798_v3, %v790_v26  ;;  %v817_v37 = vadd.f32 %v816_v4, %v792_v27  ;;  %v794_v38 = vmul.f32 %v780_v32, %v754_v28  ;;  %v796_v39 = vmul.f32 %v780_v32, %v756_v31 }
 0x1f5   : > { %v808_v1 = vadd.f32 %v807_v9, %v791_v33  ;;  %v826_v40 = vadd.f32 %v825_v10, %v793_v29  ;;  %v795_v41 = vmul.f32 %v780_v32, %v755_v34  ;;  %v797_v42 = vmul.f32 %v780_v32, %v757_v35 }
 0x1f6   : > { %v800_v44 = vadd.f32 %v799_v36, %v794_v38  ;;  %v818_v30 = vadd.f32 %v817_v37, %v796_v39  ;;  %v841_v51 = vshrl.u32 %v840_v43, 7  ;;  %v997_v58 = vmov 1966171168  }
 0x1f7   : > { %v809_v45 = vadd.f32 %v808_v1, %v795_v41  ;;  %v827_v46 = vadd.f32 %v826_v40, %v797_v42  ;;  %v855_v59 = vunpack.c.l.s4 %v997_v58  ;;  %vm879_vm3 = vcmp.lt.s32.totalorder %v840_v43, 512 }
 0x1f8   : > { %v801_v47 = vrot.slane %v800_v44, 4  ;;  %v819_v48 = vrot.slane %v818_v30, 4  ;;  %v842_v62 = vsub.s32 0, %v841_v51 }
 0x1f9   : > { %v810_v49 = vrot.slane %v809_v45, 4  ;;  %v828_v50 = vrot.slane %v827_v46, 4  ;;  %v856_v7 = vunpack.c.0.s8 %v855_v59 }
 0x1fa   : > { %v802_v52 = vadd.f32 %v801_v47, %v800_v44  ;;  %v820_v53 = vadd.f32 %v819_v48, %v818_v30  ;;  %v843_v10 = vrot.slane %v838_v2, %v842_v62 }
 0x1fb   : > { %v811_v54 = vadd.f32 %v810_v49, %v809_v45  ;;  %v829_v55 = vadd.f32 %v828_v50, %v827_v46  ;;  %v859_v17 = vsub.s32 %v856_v7, %v841_v51 }
 0x1fc   : > { %v803_v56 = vrot.slane %v802_v52, 2  ;;  %v821_v57 = vrot.slane %v820_v53, 2 }
 0x1fd   : > { %v812_v60 = vrot.slane %v811_v54, 2  ;;  %v830_v61 = vrot.slane %v829_v55, 2 }
 0x1fe   : > { %v804_v63 = vadd.f32 %v803_v56, %v802_v52  ;;  %v822_v0 = vadd.f32 %v821_v57, %v820_v53 }
 0x1ff   : > { %v813_v3 = vadd.f32 %v812_v60, %v811_v54  ;;  %v831_v4 = vadd.f32 %v830_v61, %v829_v55 }
 0x200   : > { %v805_v5 = vrot.slane %v804_v63, 1  ;;  %v823_v6 = vrot.slane %v822_v0, 1 }
 0x201   : > { %v814_v8 = vrot.slane %v813_v3, 1  ;;  %v832_v9 = vrot.slane %v831_v4, 1 }
 0x202   : > { %v806_v11 = vadd.f32 %v805_v5, %v804_v63  ;;  %v824_v12 = vadd.f32 %v823_v6, %v822_v0 }
 0x203   : > { %v815_v13 = vadd.f32 %v814_v8, %v813_v3  ;;  %v833_v14 = vadd.f32 %v832_v9, %v831_v4 }
 0x204   : > { %v844_v15 = vadd.f32 %v843_v10, %v806_v11  ;;  %v846_v16 = vadd.f32 %v843_v10, %v824_v12 }
 0x205   : > { %v845_v18 = vadd.f32 %v843_v10, %v815_v13  ;;  %v847_v19 = vadd.f32 %v843_v10, %v833_v14 }
 0x207   : > { %v852_v20 = vcombine.low %v844_v15, %v845_v18  ;;  %v853_v21 = vcombine.low %v846_v16, %v847_v19 }
 0x209   : > { %v860_v22 = vrot.slane %v852_v20, %v859_v17  ;;  %v867_v23 = vrot.slane %v853_v21, %v859_v17 }
 0x20b   : > { %v868_v24 = vcombine.low %v860_v22, %v867_v23 }
 0x20d   : > { %v875_v25 = vrot.slane %v868_v24, %v859_v17 }
 0x20f   : > { %881 = vst.msk [vmem:[%s280_s11] sm:$0xf] %vm879_vm3, %v875_v25 }
 0x210 PF: > { %s19_s26 = sadd.s32 1, %s994_s26  }
 0x211   : > { %p16_p4 = scmp.ge.s32.totalorder %s19_s26, 6  }
 0x213   :  { %18 = sbr.rel (!%p16_p4) target bundleno = 3 (0x3), region = 78 }

</bundles_post_ra>
